<compile_context>
chip_gen: v7x
topology: tpu7x:2x2x1
jax: 0.10.0
libtpu: 0.0.40
codegen_flags: <defaults>
</compile_context>

<pallas_src>
import functools

import jax
import jax.numpy as jnp
from jax.experimental import pallas as pl
from jax.experimental.pallas import tpu as pltpu


def _mlp_kernel(xT_ref, w1_ref, b1_ref, w2_ref, b2_ref, oT_ref):
    # xT_ref: (5, TB)  batch in lanes
    x = xT_ref[...]
    # Linear(5, 10) + ReLU  -- MXU matmul, lane-dense (10, TB) result.
    h = jnp.dot(w1_ref[...], x, preferred_element_type=jnp.float32)   # (10, TB)
    h = jnp.maximum(h + b1_ref[...], 0.0)                             # b1: (10,1) lane-bcast
    # Linear(10, 1) + ReLU -- VPU multiply + sublane reduce (no MXU for N=1).
    y = jnp.sum(h * w2_ref[...], axis=0, keepdims=True)               # (1, TB)
    y = y + b2_ref[0, 0]                                              # scalar bias from SMEM
    oT_ref[...] = jnp.maximum(y, 0.0).astype(oT_ref.dtype)


def _round_up(n, m):
    return ((n + m - 1) // m) * m


@functools.partial(jax.jit, static_argnames=("block_b",))
def regression_forward(x, w1, b1, w2, b2, *, block_b=512):
    """Forward pass of `Regression`.

    x : (B, 5) float32
    w1: (10, 5) float32   (torch Linear weight layout: out x in)
    b1: (10,)   float32
    w2: (1, 10) float32
    b2: (1,)    float32
    returns (B, 1) float32
    """
    B = x.shape[0]
    # Batch tile: lane dimension, multiple of 128, large enough to amortize the
    # ~0.35 us per-grid-step overhead and the MXU fill/drain.
    tb = min(block_b, _round_up(B, 128))
    bp = _round_up(B, tb)
    grid = (bp // tb,)

    # Lane-dense layout: batch in the last (lane) dimension; pad to tile size.
    xT = jnp.pad(jnp.transpose(x), ((0, 0), (0, bp - B)))   # (5, Bp)
    b1c = b1.reshape(10, 1).astype(jnp.float32)             # per-sublane bias column
    w2c = w2.reshape(10, 1).astype(jnp.float32)             # column for sublane reduce
    b2s = b2.reshape(1, 1).astype(jnp.float32)              # scalar -> SMEM

    yT = pl.pallas_call(
        _mlp_kernel,
        out_shape=jax.ShapeDtypeStruct((1, bp), jnp.float32),
        grid=grid,
        in_specs=[
            pl.BlockSpec((5, tb), lambda i: (0, i)),              # x tile (streamed)
            pl.BlockSpec((10, 5), lambda i: (0, 0)),              # w1 (resident)
            pl.BlockSpec((10, 1), lambda i: (0, 0)),              # b1 (resident)
            pl.BlockSpec((10, 1), lambda i: (0, 0)),              # w2 column (resident)
            pl.BlockSpec(memory_space=pltpu.MemorySpace.SMEM),    # b2 scalar
        ],
        out_specs=pl.BlockSpec((1, tb), lambda i: (0, i)),        # lane-dense output tile
        compiler_params=pltpu.CompilerParams(
            dimension_semantics=("parallel",),                    # megacore sharding (v7x)
        ),
    )(xT, w1, b1c, w2c, b2s)

    return jnp.transpose(yT[:, :B])                               # (B, 1)


def init_params(key):
    """Deterministic init mirroring torch.nn.Linear defaults (U(-1/sqrt(fan_in), +))."""
    k1, k2, k3, k4, k5 = jax.random.split(key, 5)
    lim1 = 1.0 / jnp.sqrt(5.0)
    w1 = jax.random.uniform(k1, (10, 5), jnp.float32, -lim1, lim1)   # torch layout (out, in)
    b1 = jax.random.uniform(k2, (10,), jnp.float32, -lim1, lim1)
    lim2 = 1.0 / jnp.sqrt(10.0)
    w2 = jax.random.uniform(k3, (1, 10), jnp.float32, -lim2, lim2)
    b2 = jax.random.uniform(k4, (1,), jnp.float32, -lim2, lim2)
    # TODO(synk): param_mul is an nn.Parameter of the module but is unused in forward().
    param_mul = jax.random.uniform(k5, (5,), jnp.float32, 0.0, 1.0)
    return w1, b1, w2, b2, param_mul


def reference_forward(x, w1, b1, w2, b2):
    h = jnp.maximum(x @ w1.T + b1, 0.0)
    return jnp.maximum(h @ w2.T + b2, 0.0)


if __name__ == "__main__":
    key = jax.random.PRNGKey(0)
    kx, kp = jax.random.split(key)

    batch = 1000  # not a multiple of 128: exercises padding + a 2-step batch grid
    x = jax.random.normal(kx, (batch, 5), jnp.float32)
    w1, b1, w2, b2, _param_mul = init_params(kp)

    y = regression_forward(x, w1, b1, w2, b2)
    y = jax.block_until_ready(y)

    y_ref = reference_forward(x, w1, b1, w2, b2)
    assert y.shape == (batch, 1)
    assert jnp.allclose(y, y_ref, atol=1e-5, rtol=1e-5)

    print("KERNEL_OK")
</pallas_src>

<mosaic_0001>
module attributes {stable_mosaic.version = 11 : i64} {
  func.func @_mlp_kernel(%arg0: i32, %arg1: memref<5x512xf32, #tpu.memory_space<vmem>>, %arg2: memref<10x5xf32, #tpu.memory_space<vmem>>, %arg3: memref<10x1xf32, #tpu.memory_space<vmem>>, %arg4: memref<10x1xf32, #tpu.memory_space<vmem>>, %arg5: memref<1x1xf32, #tpu.memory_space<smem>>, %arg6: memref<1x512xf32, #tpu.memory_space<vmem>>) attributes {dimension_semantics = [#tpu.dimension_semantics<parallel>], iteration_bounds = array<i64: 2>, scalar_prefetch = 0 : i64, scratch_operands = 0 : i64, tpu.core_type = #tpu.core_type<tc>, window_params = [{transform_indices = @transform_0, window_bounds = array<i64: 5, 512>}, {pipeline_mode = #tpu.pipeline_mode<synchronous>, transform_indices = @transform_1, window_bounds = array<i64: 10, 5>}, {pipeline_mode = #tpu.pipeline_mode<synchronous>, transform_indices = @transform_2, window_bounds = array<i64: 10, 1>}, {pipeline_mode = #tpu.pipeline_mode<synchronous>, transform_indices = @transform_3, window_bounds = array<i64: 10, 1>}, {transform_indices = @transform_4, window_bounds = array<i64: 1, 1>}, {transform_indices = @transform_5, window_bounds = array<i64: 1, 512>}]} {
    %c0 = arith.constant 0 : index
    %c0_0 = arith.constant 0 : index
    %0 = vector.load %arg1[%c0, %c0_0] : memref<5x512xf32, #tpu.memory_space<vmem>>, vector<5x512xf32>
    %c0_1 = arith.constant 0 : index
    %c0_2 = arith.constant 0 : index
    %1 = vector.load %arg2[%c0_1, %c0_2] : memref<10x5xf32, #tpu.memory_space<vmem>>, vector<10x5xf32>
    %cst = arith.constant dense<0.000000e+00> : vector<10x512xf32>
    %2 = tpu.matmul %1, %0, %cst {dimension_numbers = #tpu.dot_dimension_numbers<[1], [0], [0], [1], [0, 0, 1, 1], [], []>} : vector<10x5xf32>, vector<5x512xf32>, vector<10x512xf32> -> vector<10x512xf32>
    %c0_3 = arith.constant 0 : index
    %c0_4 = arith.constant 0 : index
    %3 = vector.load %arg3[%c0_3, %c0_4] : memref<10x1xf32, #tpu.memory_space<vmem>>, vector<10x1xf32>
    %4 = vector.broadcast %3 : vector<10x1xf32> to vector<10x512xf32>
    %5 = arith.addf %2, %4 : vector<10x512xf32>
    %cst_5 = arith.constant 0.000000e+00 : f32
    %6 = vector.broadcast %cst_5 : f32 to vector<10x512xf32>
    %7 = arith.maximumf %5, %6 : vector<10x512xf32>
    %c0_6 = arith.constant 0 : index
    %c0_7 = arith.constant 0 : index
    %8 = vector.load %arg4[%c0_6, %c0_7] : memref<10x1xf32, #tpu.memory_space<vmem>>, vector<10x1xf32>
    %9 = vector.broadcast %8 : vector<10x1xf32> to vector<10x512xf32>
    %10 = arith.mulf %7, %9 : vector<10x512xf32>
    %cst_8 = arith.constant dense<0.000000e+00> : vector<512xf32>
    %11 = vector.multi_reduction <add>, %10, %cst_8 [0] : vector<10x512xf32> to vector<512xf32>
    %12 = vector.shape_cast %11 : vector<512xf32> to vector<1x512xf32>
    %c0_9 = arith.constant 0 : index
    %c0_10 = arith.constant 0 : index
    %13 = memref.load %arg5[%c0_9, %c0_10] : memref<1x1xf32, #tpu.memory_space<smem>>
    %14 = vector.broadcast %13 : f32 to vector<1x512xf32>
    %15 = arith.addf %12, %14 : vector<1x512xf32>
    %cst_11 = arith.constant 0.000000e+00 : f32
    %16 = vector.broadcast %cst_11 : f32 to vector<1x512xf32>
    %17 = arith.maximumf %15, %16 : vector<1x512xf32>
    %c0_12 = arith.constant 0 : index
    %c0_13 = arith.constant 0 : index
    %18 = vector.load %arg6[%c0_12, %c0_13] : memref<1x512xf32, #tpu.memory_space<vmem>>, vector<1x512xf32>
    tpu.vector_store %arg6[%c0_12, %c0_13], %17 {strides = array<i32>} : memref<1x512xf32, #tpu.memory_space<vmem>>, vector<1x512xf32>,
    return
  }
  func.func @transform_0(%arg0: i32) -> (i32, i32) {
    %c0_i32 = arith.constant 0 : i32
    %c0_i32_0 = arith.constant 0 : i32
    return %c0_i32, %arg0 : i32, i32
  }
  func.func @transform_1(%arg0: i32) -> (i32, i32) {
    %c0_i32 = arith.constant 0 : i32
    %c0_i32_0 = arith.constant 0 : i32
    %c0_i32_1 = arith.constant 0 : i32
    return %c0_i32, %c0_i32_0 : i32, i32
  }
  func.func @transform_2(%arg0: i32) -> (i32, i32) {
    %c0_i32 = arith.constant 0 : i32
    %c0_i32_0 = arith.constant 0 : i32
    %c0_i32_1 = arith.constant 0 : i32
    return %c0_i32, %c0_i32_0 : i32, i32
  }
  func.func @transform_3(%arg0: i32) -> (i32, i32) {
    %c0_i32 = arith.constant 0 : i32
    %c0_i32_0 = arith.constant 0 : i32
    %c0_i32_1 = arith.constant 0 : i32
    return %c0_i32, %c0_i32_0 : i32, i32
  }
  func.func @transform_4(%arg0: i32) -> (i32, i32) {
    %c0_i32 = arith.constant 0 : i32
    %c0_i32_0 = arith.constant 0 : i32
    %c0_i32_1 = arith.constant 0 : i32
    return %c0_i32, %c0_i32_0 : i32, i32
  }
  func.func @transform_5(%arg0: i32) -> (i32, i32) {
    %c0_i32 = arith.constant 0 : i32
    %c0_i32_0 = arith.constant 0 : i32
    return %c0_i32, %arg0 : i32, i32
  }
}

</mosaic_0001>

<bundles_post_ra>
// kernel: regression_forward.1
= control target key start
LH: loop header
LB: loop body
LE: loop exit
PB: predicated region body
PF: predicated region fallthrough
CT: control target
= control target key end

     0   :  { %s649_s20 = smov 0   ;;  %s696_s0 = inlined_call_operand.vmem [shape: f32[5,1024], index: 0, kind: input, shape index: {}]   ;;  %s697_s1 = inlined_call_operand.vmem [shape: f32[10,5], index: 1, kind: input, shape index: {}]   ;;  %s698_s2 = inlined_call_operand.vmem [shape: f32[10,1], index: 2, kind: input, shape index: {}]   ;;  %s699_s3 = inlined_call_operand.vmem [shape: f32[10,1], index: 3, kind: input, shape index: {}]   ;;  %s700_s4 = inlined_call_operand.<no memory space> [shape: f32[1,1], index: 4, kind: input, shape index: {}]   ;;  %s701_s5 = inlined_call_operand.vmem [shape: f32[1,1024], index: 5, kind: output, shape index: {}]  }
   0x1   :  { %10 = sst [smem:[#allocation2]] %s700_s4 }
   0x2 LB: > { %s574_s21 = sadd.s32 4294967295, %s611_s20   ;;  %p578_p0 = scmp.ge.s32.totalorder %s611_s20, 1  ;;  %s611_s20 = sphi %s649_s20, %s16_s20  }
   0x3   : > { %p189_p1 = scmp.lt.s32.totalorder %s611_s20, 3 }
   0x5   : > { %p190_p2 = pnand %p578_p0, %p189_p1 }
   0x6   : > { %s579_s22 = sshll.u32 (!%p190_p2), %s574_s21, 2  ;;  %v613_v0 = vmov (!%p190_p2), 0.0   ;;  %v234_v1 = vld [vmem:[%s698_s2 + $0x8] sm:$0x3] (!%p190_p2)  ;;  %v614_v2 = vmov (!%p190_p2), 0   ;;  %v233_v4 = vld [vmem:[%s698_s2] sm:$0xff] (!%p190_p2) }
   0x7   : > { %193 = sbr.rel (%p190_p2) target bundleno = 271 (0x10f), region = 40  ;;  %p217_p3 = scmp.lt.s32.totalorder (!%p190_p2), %s579_s22, 7  ;;  %329 = vmatprep.mubr.f32.mxu0 (!%p190_p2), %v613_v0  ;;  %406 = vmatprep.mubr.f32.mxu1 (!%p190_p2), %v613_v0  ;;  %v428_v3 = vld [vmem:[%s699_s3 + $0x8] sm:$0x3] (!%p190_p2)  ;;  %v427_v5 = vld [vmem:[%s699_s3] sm:$0xff] (!%p190_p2)  ;;  %vm252_vm0 = vcmask (!%p190_p2), 1044480  }
   0x8   : > { %603 = vset.pattern.permute.xlu0 (!%p190_p2), %v614_v2  ;;  %604 = vset.pattern.permute.xlu1 (!%p190_p2), %v614_v2  ;;  %v231_v6 = vld [vmem:[%s697_s1] sm:$0xff] (!%p190_p2)  ;;  %vm245_vm1 = vcmask (!%p190_p2), 39936   ;;  %v232_v11 = vld [vmem:[%s697_s1 + $0x8] sm:$0x3] (!%p190_p2)  ;;  %vm447_vm2 = vcmask (!%p190_p2), 1041408   ;;  %s480_s13 = sld [smem:[#allocation2]] (!%p190_p2) }
   0x9   : > { %242 = vperm.xlu0 (!%p190_p2), %603, %v234_v1   ;;  %436 = vperm.xlu1 (!%p190_p2), %604, %v428_v3  }
   0xd   : > { %237 = vperm.xlu0 (!%p190_p2), %603, %v233_v4   ;;  %431 = vperm.xlu1 (!%p190_p2), %604, %v427_v5  }
   0xe   : > { %s703_s22 = smov (!%p217_p3, %s579_s22), 7 }
   0xf   : > { %s580_s30 = sshll.u32 %s703_s22, 3  ;;  %s225_s16 = scalar_lea.vmem %s701_s5, %s703_s22 }
  0x10   : > { %s220_s8 = scalar_lea.vmem %s696_s0, %s580_s30 }
  0x11   : > { %v228_v7 = vld [vmem:[%s220_s8 + $0x8] sm:$0x1f]  ;;  %v230_v8 = vld [vmem:[%s220_s8 + $0x18] sm:$0x1f]  ;;  %v227_v9 = vld [vmem:[%s220_s8] sm:$0x1f] }
  0x12   : > { %582 = vmatprep.subr.msk.mxu0 %vm252_vm0, %v228_v7  ;;  %586 = vmatprep.subr.msk.mxu1 %vm252_vm0, %v230_v8  ;;  %v229_v10 = vld [vmem:[%s220_s8 + $0x10] sm:$0x1f]  ;;  %v615_v7 = vmov 1966171168  }
  0x13   : > { %583 = vmatpush1.msk.msra.mxu0 %vm252_vm0, %v227_v9  ;;  %587 = vmatpush1.msk.msra.mxu1 %vm252_vm0, %v229_v10  ;;  %v497_v8 = vunpack.c.l.s4 %v615_v7  ;;  %v499_v9 = vlaneseq }
  0x14   : > { %584 = vmatmul.mubr.msk.f32.vlgmr.msra.gmra.mrb[0].mxu0 %vm245_vm1, %v231_v6  ;;  %588 = vmatmul.mubr.msk.f32.vlgmr.msra.gmra.mrb[0].mxu1 %vm245_vm1, %v231_v6 }
  0x15   : > { %335 = vmatprep.mubr.f32.mxu0 %v613_v0  ;;  %412 = vmatprep.mubr.f32.mxu1 %v613_v0  ;;  %vm521_vm3 = vcmp.lt.s32.totalorder %v499_v9, 512 }
  0x18   : > { %585 = vmatmul.mubr.msk.f32.gmra.mrb[2].mxu0 %vm245_vm1, %v232_v11  ;;  %589 = vmatmul.mubr.msk.f32.gmra.mrb[2].mxu1 %vm245_vm1, %v232_v11 }
  0x88   : > { %v243_v12 = vpop.permute.xlu0 %242  ;;  %v437_v13 = vpop.permute.xlu1 %436 }
  0x8c   : > { %v238_v14 = vpop.permute.xlu0 %237  ;;  %v432_v35 = vpop.permute.xlu1 %431 }
  0xe7   : > { %v331_v15 = vpop.f32.mrb[0].mxu0  ;;  %v408_v16 = vpop.f32.mrb[0].mxu1 }
  0xe8   : > { %v333_v17 = vpop.f32.mrb[1].mxu0  ;;  %v410_v18 = vpop.f32.mrb[1].mxu1  ;;  %v332_v19 = vadd.f32 %v331_v15, %v238_v14  ;;  %v409_v20 = vadd.f32 %v408_v16, %v238_v14 }
  0xe9   : > { %v334_v21 = vadd.f32 %v333_v17, %v238_v14  ;;  %v411_v22 = vadd.f32 %v410_v18, %v238_v14 }
  0xea   : > { %v419_v29 = vmax.f32 %v332_v19, 0.0  ;;  %v421_v30 = vmax.f32 %v409_v20, 0.0  ;;  %v498_v19 = vunpack.c.0.s8 %v497_v8  ;;  %v500_v20 = vshrl.u32 %v499_v9, 7 }
  0xeb   : > { %v337_v23 = vpop.f32.mrb[2].mxu0  ;;  %v414_v24 = vpop.f32.mrb[2].mxu1  ;;  %v420_v33 = vmax.f32 %v334_v21, 0.0  ;;  %v422_v34 = vmax.f32 %v411_v22, 0.0 }
  0xec   : > { %v338_v25 = vadd.f32 %v337_v23, %v243_v12  ;;  %v415_v26 = vadd.f32 %v414_v24, %v243_v12  ;;  %v339_v27 = vpop.f32.mrb[3].mxu0  ;;  %v416_v28 = vpop.f32.mrb[3].mxu1  ;;  %v439_v42 = vmul.f32 %v432_v35, %v419_v29  ;;  %v441_v43 = vmul.f32 %v432_v35, %v421_v30 }
  0xed   : > { %v340_v31 = vadd.f32 %v339_v27, %v243_v12  ;;  %v417_v32 = vadd.f32 %v416_v28, %v243_v12  ;;  %v440_v46 = vmul.f32 %v432_v35, %v420_v33  ;;  %v442_v47 = vmul.f32 %v432_v35, %v422_v34 }
  0xee   : > { %v423_v36 = vmax.f32 %v338_v25, 0.0  ;;  %v425_v37 = vmax.f32 %v415_v26, 0.0  ;;  %v501_v29 = vsub.s32 %v498_v19, %v500_v20 }
  0xef   : > { %v424_v38 = vmax.f32 %v340_v31, 0.0  ;;  %v426_v39 = vmax.f32 %v417_v32, 0.0 }
  0xf0   : > { %v443_v40 = vmul.f32 %v437_v13, %v423_v36  ;;  %v445_v41 = vmul.f32 %v437_v13, %v425_v37 }
  0xf1   : > { %v444_v44 = vmul.f32 %v437_v13, %v424_v38  ;;  %v446_v45 = vmul.f32 %v437_v13, %v426_v39  ;;  %v481_v13 = vstv %s480_s13 }
  0xf2   : > { %v448_v48 = vsel %vm447_vm2, %v443_v40, 0.0  ;;  %v464_v49 = vsel %vm447_vm2, %v445_v41, 0.0 }
  0xf3   : > { %v449_v50 = vadd.f32 %v448_v48, %v439_v42  ;;  %v465_v51 = vadd.f32 %v464_v49, %v441_v43  ;;  %v456_v52 = vsel %vm447_vm2, %v444_v44, 0.0  ;;  %v472_v53 = vsel %vm447_vm2, %v446_v45, 0.0 }
  0xf4   : > { %v457_v54 = vadd.f32 %v456_v52, %v440_v46  ;;  %v473_v55 = vadd.f32 %v472_v53, %v442_v47 }
  0xf5   : > { %v450_v56 = vrot.slane %v449_v50, 4  ;;  %v466_v57 = vrot.slane %v465_v51, 4 }
  0xf6   : > { %v458_v58 = vrot.slane %v457_v54, 4  ;;  %v474_v59 = vrot.slane %v473_v55, 4 }
  0xf7   : > { %v451_v60 = vadd.f32 %v450_v56, %v449_v50  ;;  %v467_v61 = vadd.f32 %v466_v57, %v465_v51 }
  0xf8   : > { %v459_v62 = vadd.f32 %v458_v58, %v457_v54  ;;  %v475_v63 = vadd.f32 %v474_v59, %v473_v55 }
  0xf9   : > { %v452_v0 = vrot.slane %v451_v60, 2  ;;  %v468_v1 = vrot.slane %v467_v61, 2 }
  0xfa   : > { %v460_v2 = vrot.slane %v459_v62, 2  ;;  %v476_v3 = vrot.slane %v475_v63, 2 }
  0xfb   : > { %v453_v4 = vadd.f32 %v452_v0, %v451_v60  ;;  %v469_v5 = vadd.f32 %v468_v1, %v467_v61 }
  0xfc   : > { %v461_v6 = vadd.f32 %v460_v2, %v459_v62  ;;  %v477_v10 = vadd.f32 %v476_v3, %v475_v63 }
  0xfd   : > { %v454_v11 = vrot.slane %v453_v4, 1  ;;  %v470_v12 = vrot.slane %v469_v5, 1 }
  0xfe   : > { %v462_v14 = vrot.slane %v461_v6, 1  ;;  %v478_v15 = vrot.slane %v477_v10, 1 }
  0xff   : > { %v455_v16 = vadd.f32 %v454_v11, %v453_v4  ;;  %v471_v17 = vadd.f32 %v470_v12, %v469_v5 }
 0x100   : > { %v463_v18 = vadd.f32 %v462_v14, %v461_v6  ;;  %v479_v21 = vadd.f32 %v478_v15, %v477_v10 }
 0x101   : > { %v482_v22 = vadd.f32 %v481_v13, %v455_v16  ;;  %v484_v23 = vadd.f32 %v481_v13, %v471_v17 }
 0x102   : > { %v483_v24 = vadd.f32 %v481_v13, %v463_v18  ;;  %v485_v25 = vadd.f32 %v481_v13, %v479_v21 }
 0x103   : > { %v486_v26 = vmax.f32 %v482_v22, 0.0  ;;  %v488_v27 = vmax.f32 %v484_v23, 0.0 }
 0x104   : > { %v487_v28 = vmax.f32 %v483_v24, 0.0  ;;  %v489_v30 = vmax.f32 %v485_v25, 0.0 }
 0x106   : > { %v494_v31 = vcombine.low %v486_v26, %v487_v28  ;;  %v495_v32 = vcombine.low %v488_v27, %v489_v30 }
 0x108   : > { %v502_v33 = vrot.slane %v494_v31, %v501_v29  ;;  %v509_v34 = vrot.slane %v495_v32, %v501_v29 }
 0x10a   : > { %v510_v35 = vcombine.low %v502_v33, %v509_v34 }
 0x10c   : > { %v517_v36 = vrot.slane %v510_v35, %v501_v29 }
 0x10e   : > { %523 = vst.msk [vmem:[%s225_s16] sm:$0xf] %vm521_vm3, %v517_v36 }
 0x10f PF: > { %s16_s20 = sadd.s32 1, %s611_s20  }
 0x110   : > { %p13_p4 = scmp.ge.s32.totalorder %s16_s20, 4  }
 0x112   :  { %15 = sbr.rel (!%p13_p4) target bundleno = 2 (0x2), region = 70 }

</bundles_post_ra>
